<compile_context>
chip_gen: v5e
topology: v5e:2x2
jax: 0.10.0
libtpu: 0.0.40
codegen_flags: <defaults>
</compile_context>

<pallas_src>
import functools

import jax
import jax.numpy as jnp
from jax.experimental import pallas as pl
from jax.experimental.pallas import tpu as pltpu


def _channel_attention_kernel(x_ref, w1_ref, w2_ref, o_ref, sum_acc, max_acc,
                              *, hw, thw, inv_hw, needs_mask):
    # x_ref block : (1, C, THW)  -- channels on sublanes, spatial on lanes
    # w1_ref      : (Cr, C)      -- fc1 weight (resident: constant index map)
    # w2_ref      : (C, Cr)      -- fc2 weight (resident)
    # o_ref block : (1, C, 1)
    # sum_acc     : VMEM (C, 1) f32 running spatial sum
    # max_acc     : VMEM (C, 1) f32 running spatial max
    k = pl.program_id(1)
    nk = pl.num_programs(1)

    @pl.when(k == 0)
    def _init():
        sum_acc[...] = jnp.zeros_like(sum_acc)
        max_acc[...] = jnp.full_like(max_acc, -jnp.inf)

    # Lazy cast: only this tile is promoted to f32 (accumulators stay f32).
    xf = x_ref[0].astype(jnp.float32)                       # (C, THW)

    if needs_mask:
        lane = jax.lax.broadcasted_iota(jnp.int32, xf.shape, 1)
        valid = (k * thw + lane) < hw
        x_sum = jnp.where(valid, xf, 0.0)
        x_max = jnp.where(valid, xf, -jnp.inf)
    else:
        x_sum = xf
        x_max = xf

    sum_acc[...] += jnp.sum(x_sum, axis=1, keepdims=True)            # (C, 1)
    max_acc[...] = jnp.maximum(max_acc[...],
                               jnp.max(x_max, axis=1, keepdims=True))

    @pl.when(k == nk - 1)
    def _finalize():
        avg = sum_acc[...] * inv_hw                                  # (C, 1)
        mx = max_acc[...]                                            # (C, 1)
        # Stack avg/max as two columns -> one pass through each matmul.
        c = avg.shape[0]
        col = jax.lax.broadcasted_iota(jnp.int32, (c, 2), 1)
        pooled = jnp.where(col == 0, avg, mx)                        # (C, 2)

        w1 = w1_ref[...].astype(jnp.float32)                         # (Cr, C)
        w2 = w2_ref[...].astype(jnp.float32)                         # (C, Cr)
        h = jnp.dot(w1, pooled, preferred_element_type=jnp.float32)  # (Cr, 2)
        h = jnp.maximum(h, 0.0)                                      # ReLU
        out2 = jnp.dot(w2, h, preferred_element_type=jnp.float32)    # (C, 2)
        out = out2[:, 0:1] + out2[:, 1:2]                            # (C, 1)
        o_ref[0] = jax.nn.sigmoid(out).astype(o_ref.dtype)


def channel_attention(x_nchw, w1, w2):
    """x_nchw: [B, C, H, W]; w1: [C//r, C]; w2: [C, C//r] -> [B, C, 1, 1]."""
    B, C, H, W = x_nchw.shape
    Cr = w1.shape[0]
    HW = H * W

    # Pure reshape (NO HBM transpose): NCHW -> (B, C, HW).
    x = x_nchw.reshape(B, C, HW)

    itemsize = jnp.dtype(x.dtype).itemsize
    try:
        vmem_cap = int(getattr(pltpu.get_tpu_info(), "vmem_capacity_bytes",
                               64 * 1024 * 1024))
    except Exception:
        vmem_cap = 64 * 1024 * 1024
    # Per-buffer x-tile budget ~ 1/8 of physical VMEM (double-buffered -> 1/4):
    # large tiles on v5e/v6e (128 MiB), conservative on v7x (64 MiB).
    block_budget = max(512 * 1024, vmem_cap // 8)
    max_thw = max(128, (block_budget // max(1, C * itemsize)) // 128 * 128)
    if HW <= max_thw:
        thw = HW                   # full-extent lane dim is always legal
    else:
        thw = max_thw              # multiple of 128 (lane axis)
    nk = pl.cdiv(HW, thw)
    needs_mask = (HW % thw) != 0

    kernel = functools.partial(
        _channel_attention_kernel,
        hw=HW, thw=thw, inv_hw=1.0 / HW, needs_mask=needs_mask)

    x_block_bytes = C * thw * itemsize
    vmem_limit = int(min(vmem_cap, 2 * x_block_bytes + 8 * 1024 * 1024))

    out = pl.pallas_call(
        kernel,
        out_shape=jax.ShapeDtypeStruct((B, C, 1), x_nchw.dtype),
        grid_spec=pltpu.PrefetchScalarGridSpec(
            num_scalar_prefetch=0,
            grid=(B, nk),
            in_specs=[
                pl.BlockSpec((1, C, thw), lambda b, k: (b, 0, k)),
                pl.BlockSpec((Cr, C), lambda b, k: (0, 0)),
                pl.BlockSpec((C, Cr), lambda b, k: (0, 0)),
            ],
            out_specs=pl.BlockSpec((1, C, 1), lambda b, k: (b, 0, 0)),
            scratch_shapes=[
                pltpu.VMEM((C, 1), jnp.float32),   # running sum
                pltpu.VMEM((C, 1), jnp.float32),   # running max
            ],
        ),
        compiler_params=pltpu.CompilerParams(
            dimension_semantics=("parallel", "arbitrary"),
            vmem_limit_bytes=vmem_limit),
    )(x, w1, w2)

    # (B, C, 1) -> NCHW (B, C, 1, 1): pure reshape, no transpose.
    return out.reshape(B, C, 1, 1)


def _reference(x_nchw, w1, w2):
    # Pure-JAX reference matching the PyTorch module.
    avg = jnp.mean(x_nchw, axis=(2, 3))            # (B, C)
    mx = jnp.max(x_nchw, axis=(2, 3))              # (B, C)

    def mlp(p):
        h = jnp.maximum(p @ w1.T, 0.0)             # (B, Cr)
        return h @ w2.T                            # (B, C)

    out = jax.nn.sigmoid(mlp(avg) + mlp(mx))
    return out[:, :, None, None]


if __name__ == "__main__":
    key = jax.random.PRNGKey(0)
    B, C, H, W = 2, 64, 16, 16
    ratio = 16
    Cr = C // ratio

    kx, k1, k2 = jax.random.split(key, 3)
    x = jax.random.normal(kx, (B, C, H, W), dtype=jnp.float32)
    # Deterministic synthetic weights, shapes match
    # nn.Conv2d(C, C//r, 1, bias=False) and nn.Conv2d(C//r, C, 1, bias=False).
    w1 = jax.random.normal(k1, (Cr, C), dtype=jnp.float32) * (2.0 / C) ** 0.5
    w2 = jax.random.normal(k2, (C, Cr), dtype=jnp.float32) * (2.0 / Cr) ** 0.5

    out = channel_attention(x, w1, w2)
    jax.block_until_ready(out)

    ref = _reference(x, w1, w2)
    assert out.shape == (B, C, 1, 1), out.shape
    assert jnp.allclose(out, ref, atol=1e-5, rtol=1e-5), float(
        jnp.max(jnp.abs(out - ref)))

    print("KERNEL_OK")
</pallas_src>

<mosaic_0001>
module attributes {stable_mosaic.version = 11 : i64} {
  func.func @_channel_attention_kernel(%arg0: i32, %arg1: i32, %arg2: memref<1x64x256xf32, #tpu.memory_space<vmem>>, %arg3: memref<4x64xf32, #tpu.memory_space<vmem>>, %arg4: memref<64x4xf32, #tpu.memory_space<vmem>>, %arg5: memref<1x64x1xf32, #tpu.memory_space<vmem>>, %arg6: memref<64x1xf32, #tpu.memory_space<vmem>>, %arg7: memref<64x1xf32, #tpu.memory_space<vmem>>) attributes {dimension_semantics = [#tpu.dimension_semantics<parallel>, #tpu.dimension_semantics<arbitrary>], iteration_bounds = array<i64: 2, 1>, scalar_prefetch = 0 : i64, scratch_operands = 2 : i64, tpu.core_type = #tpu.core_type<tc>, window_params = [{transform_indices = @transform_0, window_bounds = array<i64: 1, 64, 256>}, {pipeline_mode = #tpu.pipeline_mode<synchronous>, transform_indices = @transform_1, window_bounds = array<i64: 4, 64>}, {pipeline_mode = #tpu.pipeline_mode<synchronous>, transform_indices = @transform_2, window_bounds = array<i64: 64, 4>}, {transform_indices = @transform_3, window_bounds = array<i64: 1, 64, 1>}]} {
    %c0_i32 = arith.constant 0 : i32
    %0 = arith.cmpi eq, %arg1, %c0_i32 : i32
    %1 = arith.extui %0 : i1 to i32
    %c0_i32_0 = arith.constant 0 : i32
    %2 = arith.cmpi ne, %1, %c0_i32_0 : i32
    scf.if %2 {
      %cst_14 = arith.constant 0.000000e+00 : f32
      %18 = vector.broadcast %cst_14 : f32 to vector<64x1xf32>
      %c0_15 = arith.constant 0 : index
      %c0_16 = arith.constant 0 : index
      %19 = vector.load %arg6[%c0_15, %c0_16] : memref<64x1xf32, #tpu.memory_space<vmem>>, vector<64x1xf32>
      tpu.vector_store %arg6[%c0_15, %c0_16], %18 {strides = array<i32>} : memref<64x1xf32, #tpu.memory_space<vmem>>, vector<64x1xf32>,
      %cst_17 = arith.constant 0xFF800000 : f32
      %20 = vector.broadcast %cst_17 : f32 to vector<64x1xf32>
      %c0_18 = arith.constant 0 : index
      %c0_19 = arith.constant 0 : index
      %21 = vector.load %arg7[%c0_18, %c0_19] : memref<64x1xf32, #tpu.memory_space<vmem>>, vector<64x1xf32>
      tpu.vector_store %arg7[%c0_18, %c0_19], %20 {strides = array<i32>} : memref<64x1xf32, #tpu.memory_space<vmem>>, vector<64x1xf32>,
    } else {
    }
    %c0 = arith.constant 0 : index
    %c0_1 = arith.constant 0 : index
    %c0_2 = arith.constant 0 : index
    %3 = vector.load %arg2[%c0, %c0_1, %c0_2] : memref<1x64x256xf32, #tpu.memory_space<vmem>>, vector<1x64x256xf32>
    %4 = vector.shape_cast %3 : vector<1x64x256xf32> to vector<64x256xf32>
    %c0_3 = arith.constant 0 : index
    %c0_4 = arith.constant 0 : index
    %5 = vector.load %arg6[%c0_3, %c0_4] : memref<64x1xf32, #tpu.memory_space<vmem>>, vector<64x1xf32>
    %cst = arith.constant dense<0.000000e+00> : vector<64xf32>
    %6 = vector.multi_reduction <add>, %4, %cst [1] : vector<64x256xf32> to vector<64xf32>
    %7 = vector.shape_cast %6 : vector<64xf32> to vector<64x1xf32>
    %8 = arith.addf %5, %7 : vector<64x1xf32>
    %c0_5 = arith.constant 0 : index
    %c0_6 = arith.constant 0 : index
    %9 = vector.load %arg6[%c0_5, %c0_6] : memref<64x1xf32, #tpu.memory_space<vmem>>, vector<64x1xf32>
    tpu.vector_store %arg6[%c0_5, %c0_6], %8 {strides = array<i32>} : memref<64x1xf32, #tpu.memory_space<vmem>>, vector<64x1xf32>,
    %c0_7 = arith.constant 0 : index
    %c0_8 = arith.constant 0 : index
    %10 = vector.load %arg7[%c0_7, %c0_8] : memref<64x1xf32, #tpu.memory_space<vmem>>, vector<64x1xf32>
    %cst_9 = arith.constant dense<0xFF800000> : vector<64xf32>
    %11 = vector.multi_reduction <maximumf>, %4, %cst_9 [1] : vector<64x256xf32> to vector<64xf32>
    %12 = vector.shape_cast %11 : vector<64xf32> to vector<64x1xf32>
    %13 = arith.maximumf %10, %12 : vector<64x1xf32>
    %c0_10 = arith.constant 0 : index
    %c0_11 = arith.constant 0 : index
    %14 = vector.load %arg7[%c0_10, %c0_11] : memref<64x1xf32, #tpu.memory_space<vmem>>, vector<64x1xf32>
    tpu.vector_store %arg7[%c0_10, %c0_11], %13 {strides = array<i32>} : memref<64x1xf32, #tpu.memory_space<vmem>>, vector<64x1xf32>,
    %c0_i32_12 = arith.constant 0 : i32
    %15 = arith.cmpi eq, %arg1, %c0_i32_12 : i32
    %16 = arith.extui %15 : i1 to i32
    %c0_i32_13 = arith.constant 0 : i32
    %17 = arith.cmpi ne, %16, %c0_i32_13 : i32
    scf.if %17 {
      %c0_14 = arith.constant 0 : index
      %c0_15 = arith.constant 0 : index
      %18 = vector.load %arg6[%c0_14, %c0_15] : memref<64x1xf32, #tpu.memory_space<vmem>>, vector<64x1xf32>
      %cst_16 = arith.constant 3.906250e-03 : f32
      %19 = vector.broadcast %cst_16 : f32 to vector<64x1xf32>
      %20 = arith.mulf %18, %19 : vector<64x1xf32>
      %c0_17 = arith.constant 0 : index
      %c0_18 = arith.constant 0 : index
      %21 = vector.load %arg7[%c0_17, %c0_18] : memref<64x1xf32, #tpu.memory_space<vmem>>, vector<64x1xf32>
      %22 = tpu.iota {dimensions = array<i32: 1>} : vector<64x2xi32>
      %c0_i32_19 = arith.constant 0 : i32
      %23 = vector.broadcast %c0_i32_19 : i32 to vector<64x2xi32>
      %24 = arith.cmpi eq, %22, %23 : vector<64x2xi32>
      %25 = vector.shape_cast %20 : vector<64x1xf32> to vector<64x1xf32>
      %26 = vector.broadcast %25 : vector<64x1xf32> to vector<64x2xf32>
      %27 = vector.shape_cast %21 : vector<64x1xf32> to vector<64x1xf32>
      %28 = vector.broadcast %27 : vector<64x1xf32> to vector<64x2xf32>
      %29 = arith.select %24, %26, %28 : vector<64x2xi1>, vector<64x2xf32>
      %c0_20 = arith.constant 0 : index
      %c0_21 = arith.constant 0 : index
      %30 = vector.load %arg3[%c0_20, %c0_21] : memref<4x64xf32, #tpu.memory_space<vmem>>, vector<4x64xf32>
      %c0_22 = arith.constant 0 : index
      %c0_23 = arith.constant 0 : index
      %31 = vector.load %arg4[%c0_22, %c0_23] : memref<64x4xf32, #tpu.memory_space<vmem>>, vector<64x4xf32>
      %cst_24 = arith.constant dense<0.000000e+00> : vector<4x2xf32>
      %32 = tpu.matmul %30, %29, %cst_24 {dimension_numbers = #tpu.dot_dimension_numbers<[1], [0], [0], [1], [0, 0, 1, 1], [], []>} : vector<4x64xf32>, vector<64x2xf32>, vector<4x2xf32> -> vector<4x2xf32>
      %cst_25 = arith.constant 0.000000e+00 : f32
      %33 = vector.broadcast %cst_25 : f32 to vector<4x2xf32>
      %34 = arith.maximumf %32, %33 : vector<4x2xf32>
      %cst_26 = arith.constant dense<0.000000e+00> : vector<64x2xf32>
      %35 = tpu.matmul %31, %34, %cst_26 {dimension_numbers = #tpu.dot_dimension_numbers<[1], [0], [0], [1], [0, 0, 1, 1], [], []>} : vector<64x4xf32>, vector<4x2xf32>, vector<64x2xf32> -> vector<64x2xf32>
      %36 = vector.extract_strided_slice %35 {offsets = [0, 0], sizes = [64, 1], strides = [1, 1]} : vector<64x2xf32> to vector<64x1xf32>
      %37 = vector.extract_strided_slice %35 {offsets = [0, 1], sizes = [64, 1], strides = [1, 1]} : vector<64x2xf32> to vector<64x1xf32>
      %38 = arith.addf %36, %37 : vector<64x1xf32>
      %39 = arith.negf %38 : vector<64x1xf32>
      %40 = math.exp %39 : vector<64x1xf32>
      %cst_27 = arith.constant 1.000000e+00 : f32
      %41 = vector.broadcast %cst_27 : f32 to vector<64x1xf32>
      %42 = arith.addf %41, %40 : vector<64x1xf32>
      %43 = arith.divf %41, %42 : vector<64x1xf32>
      %c0_28 = arith.constant 0 : index
      %c0_29 = arith.constant 0 : index
      %c0_30 = arith.constant 0 : index
      %44 = vector.load %arg5[%c0_28, %c0_29, %c0_30] : memref<1x64x1xf32, #tpu.memory_space<vmem>>, vector<1x64x1xf32>
      %45 = vector.shape_cast %44 : vector<1x64x1xf32> to vector<64x1xf32>
      %46 = vector.shape_cast %43 : vector<64x1xf32> to vector<1x64x1xf32>
      tpu.vector_store %arg5[%c0_28, %c0_29, %c0_30], %46 {strides = array<i32>} : memref<1x64x1xf32, #tpu.memory_space<vmem>>, vector<1x64x1xf32>,
    } else {
    }
    return
  }
  func.func @transform_0(%arg0: i32, %arg1: i32) -> (i32, i32, i32) {
    %c0_i32 = arith.constant 0 : i32
    %c0_i32_0 = arith.constant 0 : i32
    return %arg0, %c0_i32, %arg1 : i32, i32, i32
  }
  func.func @transform_1(%arg0: i32, %arg1: i32) -> (i32, i32) {
    %c0_i32 = arith.constant 0 : i32
    %c0_i32_0 = arith.constant 0 : i32
    %c0_i32_1 = arith.constant 0 : i32
    return %c0_i32, %c0_i32_0 : i32, i32
  }
  func.func @transform_2(%arg0: i32, %arg1: i32) -> (i32, i32) {
    %c0_i32 = arith.constant 0 : i32
    %c0_i32_0 = arith.constant 0 : i32
    %c0_i32_1 = arith.constant 0 : i32
    return %c0_i32, %c0_i32_0 : i32, i32
  }
  func.func @transform_3(%arg0: i32, %arg1: i32) -> (i32, i32, i32) {
    %c0_i32 = arith.constant 0 : i32
    %c0_i32_0 = arith.constant 0 : i32
    %c0_i32_1 = arith.constant 0 : i32
    return %arg0, %c0_i32, %c0_i32_0 : i32, i32, i32
  }
}

</mosaic_0001>

<bundles_post_ra>
// kernel: tpu_custom_call.1
= control target key start
LH: loop header
LB: loop body
LE: loop exit
PB: predicated region body
PF: predicated region fallthrough
CT: control target
= control target key end

     0   :  { %8 = vsyncpa [#allocation5], 0  ;;  %s1362_s0 = inlined_call_operand.hbm [shape: f32[2,64,256], index: 0, kind: input, shape index: {}]   ;;  %s1363_s1 = inlined_call_operand.vmem [shape: f32[4,64], index: 1, kind: input, shape index: {}]   ;;  %s1364_s2 = inlined_call_operand.vmem [shape: f32[64,4], index: 2, kind: input, shape index: {}]   ;;  %s1365_s3 = inlined_call_operand.vmem [shape: f32[2,64,1], index: 3, kind: output, shape index: {}]  }
   0x1   :  { %10 = vsyncpa [#allocation5 + $0x1], 0  ;;  %s1123_s12 = smov 0   ;;  %s1125_s13 = smov 0  }
   0x2   :  { %s1127_s14 = smov 0   ;;  %s1129_s15 = smov 0  }
   0x3   :  { %s1131_s16 = smov 0   ;;  %s1133_s17 = smov 0  }
   0x4 LB: > { %s844_s18 = sadd.s32 4294967295, %s1095_s17   ;;  %s28_s19 = sadd.s32 1, %s1091_s16  ;;  %s1095_s17 = sphi %s1133_s17, %s16_s17   ;;  %s1091_s16 = sphi %s1131_s16, %s1372_s16   ;;  %s1087_s15 = sphi %s1129_s15, %s1371_s15   ;;  %s1083_s14 = sphi %s1127_s14, %s1370_s14   ;;  %s1079_s13 = sphi %s1125_s13, %s1369_s13   ;;  %s1075_s12 = sphi %s1123_s12, %s1368_s12  }
   0x5   : > { %p30_p0 = scmp.ge.s32.totalorder %s28_s19, 2  ;;  %s37_s20 = sadd.s32 1, %s1083_s14 }
   0x6   : > { %p44_p1 = scmp.ne.s32.totalorder %s1083_s14, %s1079_s13  ;;  %p45_p2 = scmp.eq.s32.totalorder %s1095_s17, 0 }
   0x7   : > { %s1374_s19 = smov (%p30_p0, %s28_s19), 0  ;;  %p50_p4 = scmp.ne.s32.totalorder %s1079_s13, %s1075_s12 }
   0x8   : > { %p1159_p3 = por %p45_p2, %p44_p1  ;;  %s32_s22 = ssub.s32 %s1091_s16, %s1374_s19 }
   0x9   : > { %p51_p5 = scmp.eq.s32.totalorder %s844_s18, 0  ;;  %p35_p6 = scmp.eq.s32.totalorder %s32_s22, 0 }
   0xa   : > { %p885_p8 = scmp.lt.s32.totalorder %s1095_s17, 2  ;;  %s148_s25 = sand.u32 1, %s1083_s14  }
   0xb   : > { %p1166_p7 = por %p51_p5, %p50_p4  ;;  %s875_s26 = sshll.u32 %s1091_s16, 7 }
   0xc   : > { %s1172_s24 = scalar_select %p35_p6, %s1083_s14, %s37_s20  }
   0xd   : > { %s848_s27 = sshll.u32 %s148_s25, 7  ;;  %s159_s30 = scalar_lea.hbm %s1362_s0, %s875_s26 }
   0xe   : > { %s160_s4 = sshll.u32 %s159_s30, 4  ;;  %s152_s5 = scalar_lea.vmem [#allocation4], %s848_s27  ;;  %s161_s4 = int_to_ptr.hbm [resolvable:$true] %s160_s4 }
   0xf   : > { %s162_s6 = sshll.u32 %s152_s5, 4  ;;  %p882_p9 = pnand %p885_p8, %p1159_p3  ;;  %s163_s6 = int_to_ptr.vmem [resolvable:$true] %s162_s6 }
  0x10   : > { %p851_p10 = scmp.ge.s32.totalorder %s1095_s17, 1  ;;  %p170_p11 = scmp.lt.s32.totalorder %s1095_s17, 3 }
  0x11   : > { %s149_s7 = scalar_lea.sflag [#allocation5], %s148_s25  ;;  %s1097_s8 = smov 256  }
  0x12   : > { %s1098_s9 = smov 16   ;;  %p171_p12 = pnand %p851_p10, %p170_p11 }
  0x13   : > { %884 = dma.hbm_to_vmem [thread:$0]  (!%p882_p9), %s161_s4, 2048, %s163_s6, %s149_s7, %s1097_s8, %s1097_s8, %s1098_s9  }
  0x14   : > { %174 = sbr.rel (%p171_p12) target bundleno = 738 (0x2e2), region = 32  ;;  %s176_s10 = sand.u32 (!%p171_p12), 1, %s1079_s13  }
  0x15   : > { %s852_s11 = sshll.u32 (!%p171_p12), %s176_s10, 7  ;;  %s177_s12 = scalar_lea.sflag (!%p171_p12), [#allocation5], %s176_s10 }
  0x16   : > { %s1184_s18 = scalar_lea.vmem (!%p171_p12), [#allocation4], %s852_s11 }
  0x19   : > { %1070 = dma.done.wait (%p1166_p7), %s177_s12, 2048  }
  0x1a   : > { %1072 = vsyncadd (%p1166_p7), %s177_s12, 4294965248  ;;  %v245_v0 = vld [vmem:[%s1184_s18 + $0x70] sm:$0xff]  ;;  %v246_v1 = vld [vmem:[%s1184_s18 + $0x78] sm:$0xff]  ;;  %vm214_vm0 = vcmask 7168   ;;  %v1099_v16 = vmov -inf   ;;  %v1100_v33 = vmov 0.0  }
  0x1b   : > { %v243_v2 = vld [vmem:[%s1184_s18 + $0x60] sm:$0xff]  ;;  %v325_v3 = vmax.f32 %v245_v0, %v246_v1  ;;  %v276_v4 = vadd.f32 %v246_v1, %v245_v0  ;;  %v244_v5 = vld [vmem:[%s1184_s18 + $0x68] sm:$0xff]  ;;  %v241_v7 = vld [vmem:[%s1184_s18 + $0x50] sm:$0xff]  ;;  %230 = vst.msk [vmem:[#allocation3 + $0x38] sm:$0xff] %vm214_vm0, %v1099_v16  ;;  %v1101_v34 = vmov 0   ;;  %vm471_vm2 = vcmask 523264  }
  0x1c   : > { %v322_v6 = vmax.f32 %v243_v2, %v244_v5  ;;  %v242_v8 = vld [vmem:[%s1184_s18 + $0x58] sm:$0xff]  ;;  %v239_v9 = vld [vmem:[%s1184_s18 + $0x40] sm:$0xff]  ;;  %v240_v10 = vld [vmem:[%s1184_s18 + $0x48] sm:$0xff]  ;;  %v273_v11 = vadd.f32 %v244_v5, %v243_v2  ;;  %223 = vst.msk [vmem:[#allocation3] sm:$0xff] %vm214_vm0, %v1099_v16  ;;  %940 = vset.pattern.permute.xlu1 %v1101_v34  ;;  %946 = vset.pattern.permute.xlu2 %v1101_v34  ;;  %vm521_vm3 = vcmask 1043456   ;;  %vm496_vm4 = vcmask 31744  }
  0x1d   : > { %326 = vmax.xlane.f32.xlu1 %v325_v3  ;;  %277 = vadd.xlane.f32.xlu0 %v276_v4  ;;  %v270_v12 = vadd.f32 %v242_v8, %v241_v7  ;;  %v267_v13 = vadd.f32 %v240_v10, %v239_v9  ;;  %v237_v14 = vld [vmem:[%s1184_s18 + $0x30] sm:$0xff]  ;;  %v238_v15 = vld [vmem:[%s1184_s18 + $0x38] sm:$0xff]  ;;  %224 = vst.msk [vmem:[#allocation3 + $0x8] sm:$0xff] %vm214_vm0, %v1099_v16  ;;  %v235_v20 = vld [vmem:[%s1184_s18 + $0x20] sm:$0xff]  ;;  %s1102_s12 = smov 127   ;;  %p205_p13 = scmp.lt.s32.totalorder %s1087_s15, 1 }
  0x1e   : > { %323 = vmax.xlane.f32.xlu2 %v322_v6  ;;  %v319_v17 = vmax.f32 %v241_v7, %v242_v8  ;;  %v264_v18 = vadd.f32 %v238_v15, %v237_v14  ;;  %225 = vst.msk [vmem:[#allocation3 + $0x10] sm:$0xff] %vm214_vm0, %v1099_v16  ;;  %v316_v19 = vmax.f32 %v239_v9, %v240_v10  ;;  %v236_v21 = vld [vmem:[%s1184_s18 + $0x28] sm:$0xff]  ;;  %v233_v22 = vld [vmem:[%s1184_s18 + $0x10] sm:$0xff]  ;;  %v234_v23 = vld [vmem:[%s1184_s18 + $0x18] sm:$0xff] }
  0x1f   : > { %226 = vst.msk [vmem:[#allocation3 + $0x18] sm:$0xff] %vm214_vm0, %v1099_v16  ;;  %v313_v24 = vmax.f32 %v237_v14, %v238_v15  ;;  %v261_v25 = vadd.f32 %v236_v21, %v235_v20  ;;  %v258_v26 = vadd.f32 %v234_v23, %v233_v22  ;;  %v231_v27 = vld [vmem:[%s1184_s18] sm:$0xff]  ;;  %v232_v28 = vld [vmem:[%s1184_s18 + $0x8] sm:$0xff]  ;;  %v310_v29 = vmax.f32 %v235_v20, %v236_v21  ;;  %s1376_s15 = smov (!%p205_p13, %s1087_s15), 1 }
  0x20   : > { %227 = vst.msk [vmem:[#allocation3 + $0x20] sm:$0xff] %vm214_vm0, %v1099_v16  ;;  %v255_v30 = vadd.f32 %v232_v28, %v231_v27  ;;  %v307_v31 = vmax.f32 %v233_v22, %v234_v23  ;;  %v304_v32 = vmax.f32 %v231_v27, %v232_v28  ;;  %952 = vset.pattern.permute.xlu0 %v1101_v34  ;;  %s876_s18 = sshll.u32 %s1376_s15, 6 }
  0x21   : > { %228 = vst.msk [vmem:[#allocation3 + $0x28] sm:$0xff] %vm214_vm0, %v1099_v16  ;;  %s1297_s22 = scalar_lea.vmem %s1365_s3, %s876_s18 }
  0x22   : > { %229 = vst.msk [vmem:[#allocation3 + $0x30] sm:$0xff] %vm214_vm0, %v1099_v16  ;;  %v303_v35 = vld [vmem:[#allocation3 + $0x38] sm:$0xff] }
  0x23   : > { %222 = vst.msk [vmem:[#allocation2 + $0x38] sm:$0xff] %vm214_vm0, %v1100_v33 }
  0x24   : > { %215 = vst.msk [vmem:[#allocation2] sm:$0xff] %vm214_vm0, %v1100_v33 }
  0x25   : > { %274 = vadd.xlane.f32.xlu0 %v273_v11  ;;  %271 = vadd.xlane.f32.xlu1 %v270_v12  ;;  %216 = vst.msk [vmem:[#allocation2 + $0x8] sm:$0xff] %vm214_vm0, %v1100_v33  ;;  %v298_v23 = vld [vmem:[#allocation3 + $0x10] sm:$0xff] }
  0x26   : > { %268 = vadd.xlane.f32.xlu2 %v267_v13  ;;  %217 = vst.msk [vmem:[#allocation2 + $0x10] sm:$0xff] %vm214_vm0, %v1100_v33  ;;  %v299_v6 = vld [vmem:[#allocation3 + $0x18] sm:$0xff] }
  0x27   : > { %218 = vst.msk [vmem:[#allocation2 + $0x18] sm:$0xff] %vm214_vm0, %v1100_v33  ;;  %v300_v59 = vld [vmem:[#allocation3 + $0x20] sm:$0xff] }
  0x28   : > { %219 = vst.msk [vmem:[#allocation2 + $0x20] sm:$0xff] %vm214_vm0, %v1100_v33  ;;  %v301_v57 = vld [vmem:[#allocation3 + $0x28] sm:$0xff] }
  0x29   : > { %220 = vst.msk [vmem:[#allocation2 + $0x28] sm:$0xff] %vm214_vm0, %v1100_v33  ;;  %v302_v37 = vld [vmem:[#allocation3 + $0x30] sm:$0xff] }
  0x2a   : > { %221 = vst.msk [vmem:[#allocation2 + $0x30] sm:$0xff] %vm214_vm0, %v1100_v33  ;;  %v254_v36 = vld [vmem:[#allocation2 + $0x38] sm:$0xff] }
  0x2c   : > { %v248_v9 = vld [vmem:[#allocation2 + $0x8] sm:$0xff] }
  0x2d   : > { %320 = vmax.xlane.f32.xlu0 %v319_v17  ;;  %265 = vadd.xlane.f32.xlu1 %v264_v18  ;;  %v249_v7 = vld [vmem:[#allocation2 + $0x10] sm:$0xff] }
  0x2e   : > { %317 = vmax.xlane.f32.xlu2 %v316_v19  ;;  %v250_v58 = vld [vmem:[#allocation2 + $0x18] sm:$0xff] }
  0x2f   : > { %v251_v46 = vld [vmem:[#allocation2 + $0x20] sm:$0xff] }
  0x30   : > { %v252_v45 = vld [vmem:[#allocation2 + $0x28] sm:$0xff] }
  0x31   : > { %v253_v44 = vld [vmem:[#allocation2 + $0x30] sm:$0xff] }
  0x35   : > { %314 = vmax.xlane.f32.xlu1 %v313_v24  ;;  %262 = vadd.xlane.f32.xlu0 %v261_v25  ;;  %v247_v25 = vld [vmem:[#allocation2] sm:$0xff] }
  0x36   : > { %259 = vadd.xlane.f32.xlu2 %v258_v26  ;;  %v297_v26 = vld [vmem:[#allocation3 + $0x8] sm:$0xff] }
  0x3d   : > { %311 = vmax.xlane.f32.xlu0 %v310_v29  ;;  %256 = vadd.xlane.f32.xlu1 %v255_v30 }
  0x3e   : > { %308 = vmax.xlane.f32.xlu2 %v307_v31 }
  0x45   : > { %305 = vmax.xlane.f32.xlu0 %v304_v32 }
  0x90   : > { %v327_v38 = vpop.xlane.xlu1 %326  ;;  %v278_v39 = vpop.xlane.xlu0 %277 }
  0x91   : > { %v335_v40 = vmax.f32 %v303_v35, %v327_v38  ;;  %v286_v41 = vadd.f32 %v278_v39, %v254_v36  ;;  %v324_v42 = vpop.xlane.xlu2 %323 }
  0x92   : > { %v334_v43 = vmax.f32 %v302_v37, %v324_v42  ;;  %v296_v37 = vld [vmem:[#allocation3] sm:$0xff] }
  0x93   : > { %343 = vst.msk [vmem:[#allocation3 + $0x38] sm:$0xff] %vm214_vm0, %v335_v40 }
  0x94   : > { %295 = vst.msk [vmem:[#allocation2 + $0x38] sm:$0xff] %vm214_vm0, %v286_v41 }
  0x95   : > { %342 = vst.msk [vmem:[#allocation3 + $0x30] sm:$0xff] %vm214_vm0, %v334_v43 }
  0x98   : > { %v275_v47 = vpop.xlane.xlu0 %274  ;;  %v272_v48 = vpop.xlane.xlu1 %271 }
  0x99   : > { %v285_v49 = vadd.f32 %v275_v47, %v253_v44  ;;  %v284_v50 = vadd.f32 %v272_v48, %v252_v45  ;;  %v269_v51 = vpop.xlane.xlu2 %268 }
  0x9a   : > { %v283_v52 = vadd.f32 %v269_v51, %v251_v46  ;;  %v370_v55 = vld [vmem:[#allocation3 + $0x38] sm:$0xff]  ;;  %v371_v51 = vlaneseq }
  0x9b   : > { %294 = vst.msk [vmem:[#allocation2 + $0x30] sm:$0xff] %vm214_vm0, %v285_v49  ;;  %v354_v53 = vld [vmem:[#allocation2 + $0x38] sm:$0xff] }
  0x9c   : > { %293 = vst.msk [vmem:[#allocation2 + $0x28] sm:$0xff] %vm214_vm0, %v284_v50  ;;  %v362_v54 = vmul.f32 0.00390625, %v354_v53  ;;  %v369_v4 = vld [vmem:[#allocation3 + $0x30] sm:$0xff]  ;;  %v372_v53 = vand.u32 127, %v371_v51 }
  0x9d   : > { %292 = vst.msk [vmem:[#allocation2 + $0x20] sm:$0xff] %vm214_vm0, %v283_v52 }
  0x9e   : > { %v941_v56 = vpack.i.bf16 %v370_v55, %v362_v54  ;;  %vm373_vm1 = vcmp.eq.s32.totalorder %v372_v53, 0 }
  0xa0   : > { %942 = vperm.xlu1 %940, %v941_v56   ;;  %v321_v60 = vpop.xlane.xlu0 %320  ;;  %v266_v61 = vpop.xlane.xlu1 %265 }
  0xa1   : > { %v333_v62 = vmax.f32 %v301_v57, %v321_v60  ;;  %v318_v63 = vpop.xlane.xlu2 %317  ;;  %v282_v0 = vadd.f32 %v266_v61, %v250_v58 }
  0xa2   : > { %v332_v1 = vmax.f32 %v300_v59, %v318_v63  ;;  %v353_v2 = vld [vmem:[#allocation2 + $0x30] sm:$0xff] }
  0xa3   : > { %341 = vst.msk [vmem:[#allocation3 + $0x28] sm:$0xff] %vm214_vm0, %v333_v62  ;;  %v361_v3 = vmul.f32 0.00390625, %v353_v2  ;;  %v352_v8 = vld [vmem:[#allocation2 + $0x28] sm:$0xff] }
  0xa4   : > { %340 = vst.msk [vmem:[#allocation3 + $0x20] sm:$0xff] %vm214_vm0, %v332_v1  ;;  %v351_v12 = vld [vmem:[#allocation2 + $0x20] sm:$0xff]  ;;  %v360_v16 = vmul.f32 0.00390625, %v352_v8 }
  0xa5   : > { %291 = vst.msk [vmem:[#allocation2 + $0x18] sm:$0xff] %vm214_vm0, %v282_v0  ;;  %v947_v5 = vpack.i.bf16 %v369_v4, %v361_v3  ;;  %v359_v20 = vmul.f32 0.00390625, %v351_v12 }
  0xa7   : > { %948 = vperm.xlu2 %946, %v947_v5  }
  0xa8   : > { %v315_v10 = vpop.xlane.xlu1 %314  ;;  %v263_v11 = vpop.xlane.xlu0 %262 }
  0xa9   : > { %v331_v13 = vmax.f32 %v299_v6, %v315_v10  ;;  %v281_v14 = vadd.f32 %v263_v11, %v249_v7  ;;  %v260_v15 = vpop.xlane.xlu2 %259 }
  0xaa   : > { %v280_v17 = vadd.f32 %v260_v15, %v248_v9  ;;  %v368_v18 = vld [vmem:[#allocation3 + $0x28] sm:$0xff] }
  0xab   : > { %339 = vst.msk [vmem:[#allocation3 + $0x18] sm:$0xff] %vm214_vm0, %v331_v13  ;;  %v953_v19 = vpack.i.bf16 %v368_v18, %v360_v16  ;;  %v367_v21 = vld [vmem:[#allocation3 + $0x20] sm:$0xff] }
  0xac   : > { %290 = vst.msk [vmem:[#allocation2 + $0x10] sm:$0xff] %vm214_vm0, %v281_v14  ;;  %v958_v22 = vpack.i.bf16 %v367_v21, %v359_v20  ;;  %v350_v24 = vld [vmem:[#allocation2 + $0x18] sm:$0xff]  ;;  %v462_v20 = vld [vmem:[%s1363_s1] sm:$0xf] }
  0xad   : > { %289 = vst.msk [vmem:[#allocation2 + $0x8] sm:$0xff] %vm214_vm0, %v280_v17  ;;  %954 = vperm.xlu0 %952, %v953_v19   ;;  %v358_v31 = vmul.f32 0.00390625, %v350_v24  ;;  %v463_v24 = vld [vmem:[%s1364_s2] sm:$0xff] }
  0xaf   : > { %959 = vperm.xlu2 %946, %v958_v22  }
  0xb0   : > { %v312_v27 = vpop.xlane.xlu0 %311  ;;  %v257_v28 = vpop.xlane.xlu1 %256 }
  0xb1   : > { %v330_v29 = vmax.f32 %v298_v23, %v312_v27  ;;  %v309_v30 = vpop.xlane.xlu2 %308  ;;  %v279_v32 = vadd.f32 %v257_v28, %v247_v25  ;;  %v466_v25 = vld [vmem:[%s1364_s2 + $0x18] sm:$0xff]  ;;  %v464_v27 = vld [vmem:[%s1364_s2 + $0x8] sm:$0xff]  ;;  %v467_v28 = vld [vmem:[%s1364_s2 + $0x20] sm:$0xff] }
  0xb2   : > { %v329_v33 = vmax.f32 %v297_v26, %v309_v30  ;;  %v366_v34 = vld [vmem:[#allocation3 + $0x18] sm:$0xff]  ;;  %v469_v26 = vld [vmem:[%s1364_s2 + $0x30] sm:$0xff] }
  0xb3   : > { %338 = vst.msk [vmem:[#allocation3 + $0x10] sm:$0xff] %vm214_vm0, %v330_v29  ;;  %v963_v35 = vpack.i.bf16 %v366_v34, %v358_v31  ;;  %v349_v36 = vld [vmem:[#allocation2 + $0x10] sm:$0xff]  ;;  %v470_v29 = vld [vmem:[%s1364_s2 + $0x38] sm:$0xff]  ;;  %v468_v31 = vld [vmem:[%s1364_s2 + $0x28] sm:$0xff] }
  0xb4   : > { %337 = vst.msk [vmem:[#allocation3 + $0x8] sm:$0xff] %vm214_vm0, %v329_v33  ;;  %v357_v38 = vmul.f32 0.00390625, %v349_v36  ;;  %v348_v39 = vld [vmem:[#allocation2 + $0x8] sm:$0xff]  ;;  %v465_v30 = vld [vmem:[%s1364_s2 + $0x10] sm:$0xff] }
  0xb5   : > { %964 = vperm.xlu1 %940, %v963_v35   ;;  %288 = vst.msk [vmem:[#allocation2] sm:$0xff] %vm214_vm0, %v279_v32  ;;  %v356_v43 = vmul.f32 0.00390625, %v348_v39 }
  0xb8   : > { %v306_v40 = vpop.xlane.xlu0 %305 }
  0xb9   : > { %v328_v41 = vmax.f32 %v296_v37, %v306_v40 }
  0xba   : > { %v365_v42 = vld [vmem:[#allocation3 + $0x10] sm:$0xff] }
  0xbb   : > { %336 = vst.msk [vmem:[#allocation3] sm:$0xff] %vm214_vm0, %v328_v41  ;;  %v968_v44 = vpack.i.bf16 %v365_v42, %v357_v38  ;;  %v364_v45 = vld [vmem:[#allocation3 + $0x8] sm:$0xff] }
  0xbc   : > { %v973_v46 = vpack.i.bf16 %v364_v45, %v356_v43  ;;  %v347_v47 = vld [vmem:[#allocation2] sm:$0xff] }
  0xbd   : > { %969 = vperm.xlu2 %946, %v968_v44   ;;  %v355_v48 = vmul.f32 0.00390625, %v347_v47 }
  0xbe   : > { %974 = vperm.xlu1 %940, %v973_v46  }
  0xc2   : > { %v363_v49 = vld [vmem:[#allocation3] sm:$0xff] }
  0xc3   : > { %v978_v50 = vpack.i.bf16 %v363_v49, %v355_v48 }
  0xc5   : > { %979 = vperm.xlu2 %946, %v978_v50  }
 0x101   : > { %v949_v52 = vpop.permute.xlu2 %948 }
 0x102   : > { %v951_v55 = vunpack.i.h.bf16 %v949_v52  ;;  %v950_v56 = vunpack.i.l.bf16 %v949_v52 }
 0x104   : > { %v460_v60 = vsel %vm373_vm1, %v950_v56, %v951_v55 }
 0x109   : > { %v960_v61 = vpop.permute.xlu2 %959 }
 0x10a   : > { %v962_v63 = vunpack.i.h.bf16 %v960_v61  ;;  %v961_v0 = vunpack.i.l.bf16 %v960_v61 }
 0x10c   : > { %v458_v5 = vsel %vm373_vm1, %v961_v0, %v962_v63 }
 0x112   : > { %v943_v54 = vpop.permute.xlu1 %942 }
 0x113   : > { %v945_v57 = vunpack.i.h.bf16 %v943_v54  ;;  %v944_v58 = vunpack.i.l.bf16 %v943_v54 }
 0x115   : > { %v461_v59 = vsel %vm373_vm1, %v944_v58, %v945_v57 }
 0x116   : > { %483 = vmatpush.msra.mxu0 %v461_v59 }
 0x117   : > { %v970_v4 = vpop.permute.xlu2 %969 }
 0x118   : > { %484 = vmatpush.msra.mxu0 %v460_v60  ;;  %v972_v7 = vunpack.i.h.bf16 %v970_v4  ;;  %v971_v8 = vunpack.i.l.bf16 %v970_v4 }
 0x11a   : > { %v456_v12 = vsel %vm373_vm1, %v971_v8, %v972_v7 }
 0x11f   : > { %v955_v62 = vpop.permute.xlu0 %954  ;;  %v980_v13 = vpop.permute.xlu2 %979 }
 0x120   : > { %v957_v1 = vunpack.i.h.bf16 %v955_v62  ;;  %v956_v2 = vunpack.i.l.bf16 %v955_v62  ;;  %v982_v15 = vunpack.i.h.bf16 %v980_v13  ;;  %v981_v16 = vunpack.i.l.bf16 %v980_v13 }
 0x122   : > { %v459_v3 = vsel %vm373_vm1, %v956_v2, %v957_v1  ;;  %v454_v21 = vsel %vm373_vm1, %v981_v16, %v982_v15 }
 0x123   : > { %485 = vmatpush.msra.mxu0 %v459_v3 }
 0x125   : > { %486 = vmatpush.msra.mxu0 %v458_v5 }
 0x127   : > { %v965_v6 = vpop.permute.xlu1 %964 }
 0x128   : > { %v967_v9 = vunpack.i.h.bf16 %v965_v6  ;;  %v966_v10 = vunpack.i.l.bf16 %v965_v6 }
 0x12a   : > { %v457_v11 = vsel %vm373_vm1, %v966_v10, %v967_v9 }
 0x12b   : > { %487 = vmatpush.msra.mxu0 %v457_v11 }
 0x12d   : > { %488 = vmatpush.msra.mxu0 %v456_v12 }
 0x130   : > { %v975_v14 = vpop.permute.xlu1 %974 }
 0x131   : > { %v977_v17 = vunpack.i.h.bf16 %v975_v14  ;;  %v976_v18 = vunpack.i.l.bf16 %v975_v14 }
 0x133   : > { %v455_v19 = vsel %vm373_vm1, %v976_v18, %v977_v17 }
 0x134   : > { %489 = vmatpush.msra.mxu0 %v455_v19 }
 0x136   : > { %490 = vmatpush.msra.mxu0 %v454_v21 }
 0x137   : > { %855 = vmatmul.msk.f32.vlgmr.msra.gmra.mxu0 %vm471_vm2, %v462_v20 }
 0x1b4   : > { %v492_v22 = vpop.f32.mrf.mxu0 }
 0x1b5   : > { %v495_v23 = vmax.f32 %v492_v22, 0.0 }
 0x1b7   : > { %856 = vmatpush.msk.msra.mxu1 %vm521_vm3, %v495_v23  ;;  %877 = vmatpush.msk.msra.mxu2 %vm521_vm3, %v495_v23 }
 0x1b8   : > { %878 = vmatpush.msk.msra.mxu3 %vm521_vm3, %v495_v23  ;;  %857 = vmatmul.msk.f32.vlgmr.msra.gmra.mxu1 %vm496_vm4, %v463_v24 }
 0x1b9   : > { %860 = vmatmul.msk.f32.vlgmr.msra.gmra.mxu2 %vm496_vm4, %v466_v25  ;;  %863 = vmatmul.msk.f32.vlgmr.msra.gmra.mxu3 %vm496_vm4, %v469_v26 }
 0x1c0   : > { %858 = vmatmul.msk.f32.gmra.mxu1 %vm496_vm4, %v464_v27 }
 0x1c1   : > { %861 = vmatmul.msk.f32.gmra.mxu2 %vm496_vm4, %v467_v28  ;;  %864 = vmatmul.msk.f32.gmra.mxu3 %vm496_vm4, %v470_v29 }
 0x1c8   : > { %859 = vmatmul.msk.f32.gmra.mxu1 %vm496_vm4, %v465_v30 }
 0x1c9   : > { %862 = vmatmul.msk.f32.gmra.mxu2 %vm496_vm4, %v468_v31 }
 0x235   : > { %v542_v32 = vpop.f32.mrf.mxu1 }
 0x236   : > { %574 = vrot.lane.b32.xlu1 %v542_v32, %s1102_s12 }
 0x23c   : > { %v551_v33 = vpop.f32.mrf.mxu2  ;;  %v560_v35 = vpop.f32.mrf.mxu3 }
 0x23d   : > { %v545_v34 = vpop.f32.mrf.mxu1 }
 0x23e   : > { %580 = vrot.lane.b32.xlu1 %v551_v33, %s1102_s12  ;;  %576 = vrot.lane.b32.xlu0 %v545_v34, %s1102_s12 }
 0x244   : > { %v554_v36 = vpop.f32.mrf.mxu2  ;;  %v1281_v38 = vpop.f32.mrf.mxu3 }
 0x245   : > { %v548_v37 = vpop.f32.mrf.mxu1 }
 0x246   : > { %586 = vrot.lane.b32.xlu1 %v560_v35, %s1102_s12  ;;  %582 = vrot.lane.b32.xlu0 %v554_v36, %s1102_s12 }
 0x247   : > { %578 = vrot.lane.b32.xlu2 %v548_v37, %s1102_s12 }
 0x24c   : > { %v557_v39 = vpop.f32.mrf.mxu2 }
 0x24e   : > { %588 = vrot.lane.b32.xlu0 %v1281_v38, %s1102_s12 }
 0x24f   : > { %584 = vrot.lane.b32.xlu2 %v557_v39, %s1102_s12 }
 0x2a1   : > { %v579_v40 = vpop.permute.xlu2 %578 }
 0x2a2   : > { %v600_v41 = vadd.f32 %v579_v40, %v548_v37 }
 0x2a4   : > { %v867_v42 = vmul.f32 -1.442695, %v600_v41 }
 0x2a6   : > { %983 = vpow2.f32 %v867_v42 }
 0x2a8   : > { %v575_v43 = vpop.permute.xlu1 %574 }
 0x2a9   : > { %v598_v44 = vadd.f32 %v575_v43, %v542_v32  ;;  %v585_v45 = vpop.permute.xlu2 %584 }
 0x2aa   : > { %v603_v46 = vadd.f32 %v585_v45, %v557_v39 }
 0x2ab   : > { %v865_v47 = vmul.f32 -1.442695, %v598_v44 }
 0x2ac   : > { %v984_v48 = vpop.eup %983  ;;  %v870_v49 = vmul.f32 -1.442695, %v603_v46 }
 0x2ad   : > { %v632_v50 = vadd.f32 1.0, %v984_v48  ;;  %985 = vpow2.f32 %v865_v47 }
 0x2ae   : > { %987 = vpow2.f32 %v870_v49 }
 0x2af   : > { %989 = vrcp.f32 %v632_v50  ;;  %v679_v2 = vand.u32 2147483648, %v632_v50  ;;  %v677_v6 = vand.u32 2147483647, %v632_v50  ;;  %vm673_vm6 = vweird.f32 %v632_v50 }
 0x2b0   : > { %v581_v51 = vpop.permute.xlu1 %580  ;;  %v577_v52 = vpop.permute.xlu0 %576 }
 0x2b1   : > { %v601_v53 = vadd.f32 %v581_v51, %v551_v33  ;;  %v599_v54 = vadd.f32 %v577_v52, %v545_v34  ;;  %v680_v14 = vor.u32 1.1754944e-38, %v679_v2  ;;  %vm678_vm8 = vcmp.eq.f32.partialorder %v677_v6, 8.507059e+37 }
 0x2b3   : > { %v986_v55 = vpop.eup %985  ;;  %v868_v56 = vmul.f32 -1.442695, %v601_v53  ;;  %v866_v59 = vmul.f32 -1.442695, %v599_v54 }
 0x2b4   : > { %v988_v57 = vpop.eup %987  ;;  %v1285_v58 = vadd.f32 1.0, %v986_v55 }
 0x2b5   : > { %v990_v60 = vpop.eup %989  ;;  %v1287_v61 = vadd.f32 1.0, %v988_v57  ;;  %991 = vpow2.f32 %v868_v56 }
 0x2b6   : > { %v669_v62 = vmul.f32 %v990_v60, %v632_v50  ;;  %993 = vrcp.f32 %v1285_v58  ;;  %vm674_vm5 = vweird.f32 %v990_v60  ;;  %v647_v21 = vand.u32 2147483647, %v1285_v58 }
 0x2b7   : > { %995 = vrcp.f32 %v1287_v61  ;;  %vm675_vm7 = vmor %vm673_vm6, %vm674_vm5  ;;  %v649_v22 = vand.u32 2147483648, %v1285_v58  ;;  %v724_v27 = vand.u32 2147483648, %v1287_v61  ;;  %v722_v30 = vand.u32 2147483647, %v1287_v61 }
 0x2b8   : > { %v670_v63 = vsub.f32 1.0, %v669_v62  ;;  %997 = vpow2.f32 %v866_v59  ;;  %v587_v0 = vpop.permute.xlu1 %586  ;;  %v583_v1 = vpop.permute.xlu0 %582  ;;  %vm643_vm11 = vweird.f32 %v1285_v58  ;;  %vm718_vm12 = vweird.f32 %v1287_v61 }
 0x2b9   : > { %v604_v3 = vadd.f32 %v587_v0, %v560_v35  ;;  %v602_v4 = vadd.f32 %v583_v1, %v554_v36  ;;  %v650_v34 = vor.u32 1.1754944e-38, %v649_v22  ;;  %vm648_vm14 = vcmp.eq.f32.partialorder %v647_v21, 8.507059e+37 }
 0x2ba   : > { %v671_v5 = vmul.f32 %v990_v60, %v670_v63  ;;  %v725_v39 = vor.u32 1.1754944e-38, %v724_v27  ;;  %vm723_vm1 = vcmp.eq.f32.partialorder %v722_v30, 8.507059e+37 }
 0x2bb   : > { %v992_v7 = vpop.eup %991  ;;  %v871_v8 = vmul.f32 -1.442695, %v604_v3  ;;  %v869_v12 = vmul.f32 -1.442695, %v602_v4 }
 0x2bc   : > { %v994_v9 = vpop.eup %993  ;;  %v672_v10 = vadd.f32 %v990_v60, %v671_v5  ;;  %v1292_v11 = vadd.f32 1.0, %v992_v7 }
 0x2bd   : > { %v996_v13 = vpop.eup %995  ;;  %v639_v15 = vmul.f32 %v994_v9, %v1285_v58  ;;  %999 = vpow2.f32 %v871_v8  ;;  %vm644_vm9 = vweird.f32 %v994_v9 }
 0x2be   : > { %v998_v16 = vpop.eup %997  ;;  %v676_v17 = vsel %vm675_vm7, %v990_v60, %v672_v10  ;;  %v714_v18 = vmul.f32 %v996_v13, %v1287_v61  ;;  %1001 = vrcp.f32 %v1292_v11  ;;  %vm719_vm10 = vweird.f32 %v996_v13  ;;  %vm645_vm13 = vmor %vm643_vm11, %vm644_vm9 }
 0x2bf   : > { %v681_v19 = vsel %vm678_vm8, %v680_v14, %v676_v17  ;;  %v640_v20 = vsub.f32 1.0, %v639_v15  ;;  %v1306_v24 = vadd.f32 1.0, %v998_v16  ;;  %1003 = vpow2.f32 %v869_v12  ;;  %vm720_vm15 = vmor %vm718_vm12, %vm719_vm10 }
 0x2c0   : > { %760 = vst.msk [vmem:[%s1297_s22 + $0x10] sm:$0xff] %vm214_vm0, %v681_v19  ;;  %v715_v23 = vsub.f32 1.0, %v714_v18  ;;  %v589_v25 = vpop.permute.xlu0 %588  ;;  %v692_v47 = vand.u32 2147483647, %v1292_v11  ;;  %v694_v48 = vand.u32 2147483648, %v1292_v11  ;;  %vm688_vm3 = vweird.f32 %v1292_v11 }
 0x2c1   : > { %v641_v26 = vmul.f32 %v994_v9, %v640_v20  ;;  %v605_v28 = vadd.f32 %v589_v25, %v1281_v38  ;;  %1005 = vrcp.f32 %v1306_v24  ;;  %v662_v56 = vand.u32 2147483647, %v1306_v24 }
 0x2c2   : > { %v716_v29 = vmul.f32 %v996_v13, %v715_v23  ;;  %vm693_vm5 = vcmp.eq.f32.partialorder %v692_v47, 8.507059e+37  ;;  %v695_v55 = vor.u32 1.1754944e-38, %v694_v48  ;;  %v664_v57 = vand.u32 2147483648, %v1306_v24 }
 0x2c3   : > { %v1000_v31 = vpop.eup %999  ;;  %v642_v32 = vadd.f32 %v994_v9, %v641_v26  ;;  %v872_v37 = vmul.f32 -1.442695, %v605_v28  ;;  %vm658_vm7 = vweird.f32 %v1306_v24  ;;  %vm663_vm9 = vcmp.eq.f32.partialorder %v662_v56, 8.507059e+37 }
 0x2c4   : > { %v1002_v33 = vpop.eup %1001  ;;  %v717_v35 = vadd.f32 %v996_v13, %v716_v29  ;;  %v1314_v36 = vadd.f32 1.0, %v1000_v31  ;;  %v665_v3 = vor.u32 1.1754944e-38, %v664_v57 }
 0x2c5   : > { %v646_v38 = vsel %vm645_vm13, %v994_v9, %v642_v32  ;;  %v684_v40 = vmul.f32 %v1002_v33, %v1292_v11  ;;  %v1004_v41 = vpop.eup %1003  ;;  %vm689_vm2 = vweird.f32 %v1002_v33 }
 0x2c6   : > { %v651_v42 = vsel %vm648_vm14, %v650_v34, %v646_v38  ;;  %v721_v43 = vsel %vm720_vm15, %v996_v13, %v717_v35  ;;  %1007 = vrcp.f32 %v1314_v36  ;;  %v634_v49 = vadd.f32 1.0, %v1004_v41  ;;  %vm690_vm4 = vmor %vm688_vm3, %vm689_vm2 }
 0x2c7   : > { %758 = vst.msk [vmem:[%s1297_s22] sm:$0xff] %vm214_vm0, %v651_v42  ;;  %v726_v44 = vsel %vm723_vm1, %v725_v39, %v721_v43  ;;  %v685_v45 = vsub.f32 1.0, %v684_v40  ;;  %v1006_v46 = vpop.eup %1005  ;;  %1009 = vpow2.f32 %v872_v37  ;;  %v737_v4 = vand.u32 2147483647, %v1314_v36 }
 0x2c8   : > { %763 = vst.msk [vmem:[%s1297_s22 + $0x28] sm:$0xff] %vm214_vm0, %v726_v44  ;;  %v654_v51 = vmul.f32 %v1006_v46, %v1306_v24  ;;  %1011 = vrcp.f32 %v634_v49  ;;  %vm659_vm6 = vweird.f32 %v1006_v46  ;;  %v739_v5 = vand.u32 2147483648, %v1314_v36 }
 0x2c9   : > { %v686_v50 = vmul.f32 %v1002_v33, %v685_v45  ;;  %vm660_vm8 = vmor %vm658_vm7, %vm659_vm6  ;;  %vm733_vm11 = vweird.f32 %v1314_v36  ;;  %vm738_vm13 = vcmp.eq.f32.partialorder %v737_v4, 8.507059e+37  ;;  %v709_v13 = vand.u32 2147483648, %v634_v49 }
 0x2ca   : > { %v655_v53 = vsub.f32 1.0, %v654_v51  ;;  %v740_v12 = vor.u32 1.1754944e-38, %v739_v5  ;;  %v707_v16 = vand.u32 2147483647, %v634_v49  ;;  %vm703_vm15 = vweird.f32 %v634_v49 }
 0x2cb   : > { %v687_v52 = vadd.f32 %v1002_v33, %v686_v50  ;;  %v710_v20 = vor.u32 1.1754944e-38, %v709_v13 }
 0x2cc   : > { %v1008_v54 = vpop.eup %1007  ;;  %v656_v59 = vmul.f32 %v1006_v46, %v655_v53  ;;  %vm708_vm2 = vcmp.eq.f32.partialorder %v707_v16, 8.507059e+37 }
 0x2cd   : > { %v691_v58 = vsel %vm690_vm4, %v1002_v33, %v687_v52  ;;  %v729_v60 = vmul.f32 %v1008_v54, %v1314_v36  ;;  %v1010_v61 = vpop.eup %1009  ;;  %vm734_vm10 = vweird.f32 %v1008_v54 }
 0x2ce   : > { %v696_v62 = vsel %vm693_vm5, %v695_v55, %v691_v58  ;;  %v657_v63 = vadd.f32 %v1006_v46, %v656_v59  ;;  %v637_v1 = vadd.f32 1.0, %v1010_v61  ;;  %v1012_v2 = vpop.eup %1011  ;;  %vm735_vm12 = vmor %vm733_vm11, %vm734_vm10 }
 0x2cf   : > { %761 = vst.msk [vmem:[%s1297_s22 + $0x18] sm:$0xff] %vm214_vm0, %v696_v62  ;;  %v730_v0 = vsub.f32 1.0, %v729_v60  ;;  %v699_v8 = vmul.f32 %v1012_v2, %v634_v49  ;;  %vm704_vm14 = vweird.f32 %v1012_v2 }
 0x2d0   : > { %v661_v6 = vsel %vm660_vm8, %v1006_v46, %v657_v63  ;;  %1013 = vrcp.f32 %v637_v1  ;;  %vm705_vm1 = vmor %vm703_vm15, %vm704_vm14  ;;  %v754_v25 = vand.u32 2147483648, %v637_v1  ;;  %v752_v27 = vand.u32 2147483647, %v637_v1 }
 0x2d1   : > { %v731_v7 = vmul.f32 %v1008_v54, %v730_v0  ;;  %v666_v9 = vsel %vm663_vm9, %v665_v3, %v661_v6  ;;  %v700_v11 = vsub.f32 1.0, %v699_v8  ;;  %vm748_vm4 = vweird.f32 %v637_v1 }
 0x2d2   : > { %759 = vst.msk [vmem:[%s1297_s22 + $0x8] sm:$0xff] %vm214_vm0, %v666_v9  ;;  %v755_v29 = vor.u32 1.1754944e-38, %v754_v25  ;;  %vm753_vm6 = vcmp.eq.f32.partialorder %v752_v27, 8.507059e+37 }
 0x2d3   : > { %v732_v10 = vadd.f32 %v1008_v54, %v731_v7  ;;  %v701_v15 = vmul.f32 %v1012_v2, %v700_v11 }
 0x2d5   : > { %v736_v14 = vsel %vm735_vm12, %v1008_v54, %v732_v10  ;;  %v702_v18 = vadd.f32 %v1012_v2, %v701_v15 }
 0x2d6   : > { %v741_v17 = vsel %vm738_vm13, %v740_v12, %v736_v14  ;;  %v1014_v19 = vpop.eup %1013 }
 0x2d7   : > { %764 = vst.msk [vmem:[%s1297_s22 + $0x30] sm:$0xff] %vm214_vm0, %v741_v17  ;;  %v706_v21 = vsel %vm705_vm1, %v1012_v2, %v702_v18  ;;  %v744_v22 = vmul.f32 %v1014_v19, %v637_v1  ;;  %vm749_vm3 = vweird.f32 %v1014_v19 }
 0x2d8   : > { %v711_v23 = vsel %vm708_vm2, %v710_v20, %v706_v21  ;;  %vm750_vm5 = vmor %vm748_vm4, %vm749_vm3 }
 0x2d9   : > { %762 = vst.msk [vmem:[%s1297_s22 + $0x20] sm:$0xff] %vm214_vm0, %v711_v23  ;;  %v745_v24 = vsub.f32 1.0, %v744_v22 }
 0x2db   : > { %v746_v26 = vmul.f32 %v1014_v19, %v745_v24 }
 0x2dd   : > { %v747_v28 = vadd.f32 %v1014_v19, %v746_v26 }
 0x2df   : > { %v751_v30 = vsel %vm750_vm5, %v1014_v19, %v747_v28 }
 0x2e0   : > { %v756_v31 = vsel %vm753_vm6, %v755_v29, %v751_v30 }
 0x2e1   : > { %765 = vst.msk [vmem:[%s1297_s22 + $0x38] sm:$0xff] %vm214_vm0, %v756_v31 }
 0x2e2 PF: > { %s16_s17 = sadd.s32 1, %s1095_s17   ;;  %s1368_s12 = smov %s1079_s13 }
 0x2e3   : > { %p13_p0 = scmp.ge.s32.totalorder %s16_s17, 4   ;;  %s1369_s13 = smov %s1083_s14 }
 0x2e4   : > { %s1370_s14 = smov %s1172_s24  ;;  %s1371_s15 = smov %s1091_s16 }
 0x2e5   : > { %s1372_s16 = smov %s1374_s19  ;;  %15 = sbr.rel (!%p13_p0) target bundleno = 4 (0x4), region = 80 }
 0x2ea   :  { %787 = vsyncpa [#allocation5], 1 }
 0x2eb   :  { %789 = vsyncpa [#allocation5 + $0x1], 1 }

</bundles_post_ra>
